<compile_context>
chip_gen: v7x
topology: tpu7x:2x2x1
jax: 0.10.0
libtpu: 0.0.40
codegen_flags: <defaults>
</compile_context>

<pallas_src>
import jax
import jax.numpy as jnp
from jax.experimental import pallas as pl
from jax.experimental.pallas import tpu as pltpu

IN_DIM = 28 * 28          # 784
HIDDEN = 32
RANK = 8
OUT_DIM = 10
OUT_PAD = 128             # lane-dense output width (wrapper slices [:, :10])

TB_TARGET = 4096          # batch-tile target (rows)
VMEM_LIMIT = 48 * 1024 * 1024   # > v5e's 16 MiB default, < v7x's 64 MiB physical


def _choose_tb(batch):
    """Batch tile: one tile for small batches, balanced multiple-of-8 tiles
    (target ~TB_TARGET rows) for large ones.  Partial last tiles are fine —
    Pallas masks out-of-bounds rows, each output row depends only on its own
    input row."""
    if batch <= TB_TARGET:
        return max(8, -(-batch // 8) * 8)
    steps = -(-batch // TB_TARGET)          # ceil
    tb = -(-batch // steps)                 # balanced tile size
    return -(-tb // 8) * 8                  # round up to sublane multiple


def lowrank_net_kernel(
    x_ref,                     # (TB, 784)     f32  (cast to bf16 in-kernel)
    w_in_ref, b_in_ref,        # (784, 32) bf16, (1, 32) f32
    w_h0_ref, b_h0_ref,        # (32, 32)  bf16, (1, 32) f32
    w_l1_ref, b_l1_ref,        # folded u1@v1 (32, 32) bf16, (1, 32) f32
    w_l2_ref, b_l2_ref,        # folded u2@v2 (32, 32) bf16, (1, 32) f32
    w_out_ref, b_out_ref,      # (32, OUT_PAD) bf16, (1, OUT_PAD) f32
    out_ref,                   # (TB, OUT_PAD) bf16
):
    # bf16 cast happens here, on the VMEM tile (no extra HBM pass).
    x = x_ref[...].astype(jnp.bfloat16)

    # input layer + ReLU  (bf16 x bf16 -> f32 accumulate)
    h = jnp.dot(x, w_in_ref[...], preferred_element_type=jnp.float32) + b_in_ref[...]
    h = jnp.maximum(h, 0.0).astype(jnp.bfloat16)

    # hidden layer 0: full-rank Linear + ReLU
    h = jnp.dot(h, w_h0_ref[...], preferred_element_type=jnp.float32) + b_h0_ref[...]
    h = jnp.maximum(h, 0.0).astype(jnp.bfloat16)

    # hidden layer 1: LowRankLayer (u@v folded into one 32x32 weight) + ReLU
    h = jnp.dot(h, w_l1_ref[...], preferred_element_type=jnp.float32) + b_l1_ref[...]
    h = jnp.maximum(h, 0.0).astype(jnp.bfloat16)

    # hidden layer 2: LowRankLayer (folded) + ReLU
    h = jnp.dot(h, w_l2_ref[...], preferred_element_type=jnp.float32) + b_l2_ref[...]
    h = jnp.maximum(h, 0.0).astype(jnp.bfloat16)

    # output layer (no activation): f32 accumulate + bias, bf16 lane-dense store
    o = jnp.dot(h, w_out_ref[...], preferred_element_type=jnp.float32) + b_out_ref[...]
    out_ref[...] = o.astype(out_ref.dtype)


@jax.jit
def lowrank_net_forward(x, params):
    # x: any shape reshaping to (-1, 784)  (PyTorch: x.view(-1, 28*28))
    x2 = x.reshape(-1, IN_DIM).astype(jnp.float32)
    B = x2.shape[0]
    TB = _choose_tb(B)
    grid_b = pl.cdiv(B, TB)

    (w_in, b_in, w_h0, b_h0, u1, v1, bv1, u2, v2, bv2, w_out, b_out) = params

    # --- tiny wrapper-side weight prep (no pass over x) ---------------------
    # fold the rank-8 factors into single 32x32 weights (one-time 32x8x32 GEMM)
    w_l1 = u1 @ v1
    w_l2 = u2 @ v2
    # pad output weight/bias to OUT_PAD lanes for unmasked lane-dense stores
    w_out_p = jnp.pad(w_out, ((0, 0), (0, OUT_PAD - OUT_DIM)))
    b_out_p = jnp.pad(b_out, ((0, 0), (0, OUT_PAD - OUT_DIM)))

    # weights in bf16 (native MXU path); biases stay f32 for the f32 accumulate
    bf = lambda a: a.astype(jnp.bfloat16)
    f32 = lambda a: a.astype(jnp.float32)
    w_in_b, w_h0_b, w_l1_b, w_l2_b, w_out_b = map(bf, (w_in, w_h0, w_l1, w_l2, w_out_p))
    b_in_f, b_h0_f, b_l1_f, b_l2_f, b_out_f = map(f32, (b_in, b_h0, bv1, bv2, b_out_p))

    # --- pallas_call --------------------------------------------------------
    # Weights/biases: whole-array blocks with a constant index_map -> DMA'd
    # once and resident in VMEM across all grid steps. Only x / out are tiled.
    def whole(a):
        nd = a.ndim
        return pl.BlockSpec(a.shape, lambda i, _nd=nd: (0,) * _nd)

    weight_args = (w_in_b, b_in_f, w_h0_b, b_h0_f,
                   w_l1_b, b_l1_f, w_l2_b, b_l2_f,
                   w_out_b, b_out_f)

    in_specs = [pl.BlockSpec((TB, IN_DIM), lambda i: (i, 0))]
    in_specs += [whole(a) for a in weight_args]
    out_spec = pl.BlockSpec((TB, OUT_PAD), lambda i: (i, 0))

    weight_bytes = sum(int(a.size) * a.dtype.itemsize for a in weight_args)
    cost = pl.CostEstimate(
        flops=2 * B * (IN_DIM * HIDDEN + 3 * HIDDEN * HIDDEN + HIDDEN * OUT_PAD),
        transcendentals=0,
        bytes_accessed=B * IN_DIM * 4 + B * OUT_PAD * 2 + weight_bytes,
    )

    out_padded = pl.pallas_call(
        lowrank_net_kernel,
        out_shape=jax.ShapeDtypeStruct((B, OUT_PAD), jnp.bfloat16),
        grid_spec=pltpu.PrefetchScalarGridSpec(
            num_scalar_prefetch=0,
            grid=(grid_b,),
            in_specs=in_specs,
            out_specs=out_spec,
        ),
        compiler_params=pltpu.CompilerParams(
            dimension_semantics=("parallel",),
            vmem_limit_bytes=VMEM_LIMIT,
        ),
        cost_estimate=cost,
    )(x2, *weight_args)

    # drop the lane padding; return f32 logits (tiny slice + cast)
    return out_padded[:, :OUT_DIM].astype(jnp.float32)


def init_params(key):
    """Deterministic parameter init (shapes mirror the PyTorch module).

    Weights stored as (in_features, out_features); biases as (1, out)."""
    ks = jax.random.split(key, 12)
    scale = 0.05

    def w(k, shape):
        return (scale * jax.random.normal(k, shape)).astype(jnp.float32)

    w_in = w(ks[0], (IN_DIM, HIDDEN))
    b_in = w(ks[1], (1, HIDDEN))
    w_h0 = w(ks[2], (HIDDEN, HIDDEN))
    b_h0 = w(ks[3], (1, HIDDEN))
    u1 = w(ks[4], (HIDDEN, RANK))        # u_layer: no bias
    v1 = w(ks[5], (RANK, HIDDEN))
    bv1 = w(ks[6], (1, HIDDEN))
    u2 = w(ks[7], (HIDDEN, RANK))
    v2 = w(ks[8], (RANK, HIDDEN))
    bv2 = w(ks[9], (1, HIDDEN))
    w_out = w(ks[10], (HIDDEN, OUT_DIM))
    b_out = w(ks[11], (1, OUT_DIM))
    return (w_in, b_in, w_h0, b_h0, u1, v1, bv1, u2, v2, bv2, w_out, b_out)


def reference_forward(x, params):
    """Pure-JAX f32 reference replicating the PyTorch forward (two-matmul LowRank)."""
    (w_in, b_in, w_h0, b_h0, u1, v1, bv1, u2, v2, bv2, w_out, b_out) = params
    h = x.reshape(-1, IN_DIM)
    h = jax.nn.relu(h @ w_in + b_in)
    h = jax.nn.relu(h @ w_h0 + b_h0)
    h = jax.nn.relu((h @ u1) @ v1 + bv1)
    h = jax.nn.relu((h @ u2) @ v2 + bv2)
    return h @ w_out + b_out


if __name__ == "__main__":
    key = jax.random.PRNGKey(0)
    pkey, xkey = jax.random.split(key)
    params = init_params(pkey)

    # MNIST-like input: (batch, 1, 28, 28); forward flattens to (-1, 784).
    batch = 16
    x = jax.random.normal(xkey, (batch, 1, 28, 28), dtype=jnp.float32)

    out = lowrank_net_forward(x, params)
    out = jax.block_until_ready(out)

    ref = reference_forward(x, params)
    assert out.shape == (batch, OUT_DIM)
    # bf16 weights/activations/output (f32 accumulate) -> loose tolerance vs f32 ref
    assert jnp.allclose(out, ref, atol=5e-2, rtol=5e-2), "mismatch vs reference"

    print("KERNEL_OK")
</pallas_src>

<mosaic_0001>
module attributes {stable_mosaic.version = 11 : i64} {
  func.func @lowrank_net_kernel(%arg0: i32, %arg1: memref<16x784xf32, #tpu.memory_space<vmem>>, %arg2: memref<784x32xbf16, #tpu.memory_space<vmem>>, %arg3: memref<1x32xf32, #tpu.memory_space<vmem>>, %arg4: memref<32x32xbf16, #tpu.memory_space<vmem>>, %arg5: memref<1x32xf32, #tpu.memory_space<vmem>>, %arg6: memref<32x32xbf16, #tpu.memory_space<vmem>>, %arg7: memref<1x32xf32, #tpu.memory_space<vmem>>, %arg8: memref<32x32xbf16, #tpu.memory_space<vmem>>, %arg9: memref<1x32xf32, #tpu.memory_space<vmem>>, %arg10: memref<32x128xbf16, #tpu.memory_space<vmem>>, %arg11: memref<1x128xf32, #tpu.memory_space<vmem>>, %arg12: memref<16x128xbf16, #tpu.memory_space<vmem>>) attributes {dimension_semantics = [#tpu.dimension_semantics<parallel>], iteration_bounds = array<i64: 1>, scalar_prefetch = 0 : i64, scratch_operands = 0 : i64, tpu.core_type = #tpu.core_type<tc>, window_params = [{transform_indices = @transform_0, window_bounds = array<i64: 16, 784>}, {pipeline_mode = #tpu.pipeline_mode<synchronous>, transform_indices = @transform_1, window_bounds = array<i64: 784, 32>}, {pipeline_mode = #tpu.pipeline_mode<synchronous>, transform_indices = @transform_2, window_bounds = array<i64: 1, 32>}, {pipeline_mode = #tpu.pipeline_mode<synchronous>, transform_indices = @transform_3, window_bounds = array<i64: 32, 32>}, {pipeline_mode = #tpu.pipeline_mode<synchronous>, transform_indices = @transform_4, window_bounds = array<i64: 1, 32>}, {pipeline_mode = #tpu.pipeline_mode<synchronous>, transform_indices = @transform_5, window_bounds = array<i64: 32, 32>}, {pipeline_mode = #tpu.pipeline_mode<synchronous>, transform_indices = @transform_6, window_bounds = array<i64: 1, 32>}, {pipeline_mode = #tpu.pipeline_mode<synchronous>, transform_indices = @transform_7, window_bounds = array<i64: 32, 32>}, {pipeline_mode = #tpu.pipeline_mode<synchronous>, transform_indices = @transform_8, window_bounds = array<i64: 1, 32>}, {pipeline_mode = #tpu.pipeline_mode<synchronous>, transform_indices = @transform_9, window_bounds = array<i64: 32, 128>}, {pipeline_mode = #tpu.pipeline_mode<synchronous>, transform_indices = @transform_10, window_bounds = array<i64: 1, 128>}, {transform_indices = @transform_11, window_bounds = array<i64: 16, 128>}]} {
    %c0 = arith.constant 0 : index
    %c0_0 = arith.constant 0 : index
    %0 = vector.load %arg1[%c0, %c0_0] : memref<16x784xf32, #tpu.memory_space<vmem>>, vector<16x784xf32>
    %1 = arith.truncf %0 : vector<16x784xf32> to vector<16x784xbf16>
    %c0_1 = arith.constant 0 : index
    %c0_2 = arith.constant 0 : index
    %2 = vector.load %arg2[%c0_1, %c0_2] : memref<784x32xbf16, #tpu.memory_space<vmem>>, vector<784x32xbf16>
    %cst = arith.constant dense<0.000000e+00> : vector<16x32xf32>
    %3 = tpu.matmul %1, %2, %cst {dimension_numbers = #tpu.dot_dimension_numbers<[1], [0], [0], [1], [0, 0, 1, 1], [], []>} : vector<16x784xbf16>, vector<784x32xbf16>, vector<16x32xf32> -> vector<16x32xf32>
    %c0_3 = arith.constant 0 : index
    %c0_4 = arith.constant 0 : index
    %4 = vector.load %arg3[%c0_3, %c0_4] : memref<1x32xf32, #tpu.memory_space<vmem>>, vector<1x32xf32>
    %5 = vector.broadcast %4 : vector<1x32xf32> to vector<16x32xf32>
    %6 = arith.addf %3, %5 : vector<16x32xf32>
    %cst_5 = arith.constant 0.000000e+00 : f32
    %7 = vector.broadcast %cst_5 : f32 to vector<16x32xf32>
    %8 = arith.maximumf %6, %7 : vector<16x32xf32>
    %9 = arith.truncf %8 : vector<16x32xf32> to vector<16x32xbf16>
    %c0_6 = arith.constant 0 : index
    %c0_7 = arith.constant 0 : index
    %10 = vector.load %arg4[%c0_6, %c0_7] : memref<32x32xbf16, #tpu.memory_space<vmem>>, vector<32x32xbf16>
    %cst_8 = arith.constant dense<0.000000e+00> : vector<16x32xf32>
    %11 = tpu.matmul %9, %10, %cst_8 {dimension_numbers = #tpu.dot_dimension_numbers<[1], [0], [0], [1], [0, 0, 1, 1], [], []>} : vector<16x32xbf16>, vector<32x32xbf16>, vector<16x32xf32> -> vector<16x32xf32>
    %c0_9 = arith.constant 0 : index
    %c0_10 = arith.constant 0 : index
    %12 = vector.load %arg5[%c0_9, %c0_10] : memref<1x32xf32, #tpu.memory_space<vmem>>, vector<1x32xf32>
    %13 = vector.broadcast %12 : vector<1x32xf32> to vector<16x32xf32>
    %14 = arith.addf %11, %13 : vector<16x32xf32>
    %cst_11 = arith.constant 0.000000e+00 : f32
    %15 = vector.broadcast %cst_11 : f32 to vector<16x32xf32>
    %16 = arith.maximumf %14, %15 : vector<16x32xf32>
    %17 = arith.truncf %16 : vector<16x32xf32> to vector<16x32xbf16>
    %c0_12 = arith.constant 0 : index
    %c0_13 = arith.constant 0 : index
    %18 = vector.load %arg6[%c0_12, %c0_13] : memref<32x32xbf16, #tpu.memory_space<vmem>>, vector<32x32xbf16>
    %cst_14 = arith.constant dense<0.000000e+00> : vector<16x32xf32>
    %19 = tpu.matmul %17, %18, %cst_14 {dimension_numbers = #tpu.dot_dimension_numbers<[1], [0], [0], [1], [0, 0, 1, 1], [], []>} : vector<16x32xbf16>, vector<32x32xbf16>, vector<16x32xf32> -> vector<16x32xf32>
    %c0_15 = arith.constant 0 : index
    %c0_16 = arith.constant 0 : index
    %20 = vector.load %arg7[%c0_15, %c0_16] : memref<1x32xf32, #tpu.memory_space<vmem>>, vector<1x32xf32>
    %21 = vector.broadcast %20 : vector<1x32xf32> to vector<16x32xf32>
    %22 = arith.addf %19, %21 : vector<16x32xf32>
    %cst_17 = arith.constant 0.000000e+00 : f32
    %23 = vector.broadcast %cst_17 : f32 to vector<16x32xf32>
    %24 = arith.maximumf %22, %23 : vector<16x32xf32>
    %25 = arith.truncf %24 : vector<16x32xf32> to vector<16x32xbf16>
    %c0_18 = arith.constant 0 : index
    %c0_19 = arith.constant 0 : index
    %26 = vector.load %arg8[%c0_18, %c0_19] : memref<32x32xbf16, #tpu.memory_space<vmem>>, vector<32x32xbf16>
    %cst_20 = arith.constant dense<0.000000e+00> : vector<16x32xf32>
    %27 = tpu.matmul %25, %26, %cst_20 {dimension_numbers = #tpu.dot_dimension_numbers<[1], [0], [0], [1], [0, 0, 1, 1], [], []>} : vector<16x32xbf16>, vector<32x32xbf16>, vector<16x32xf32> -> vector<16x32xf32>
    %c0_21 = arith.constant 0 : index
    %c0_22 = arith.constant 0 : index
    %28 = vector.load %arg9[%c0_21, %c0_22] : memref<1x32xf32, #tpu.memory_space<vmem>>, vector<1x32xf32>
    %29 = vector.broadcast %28 : vector<1x32xf32> to vector<16x32xf32>
    %30 = arith.addf %27, %29 : vector<16x32xf32>
    %cst_23 = arith.constant 0.000000e+00 : f32
    %31 = vector.broadcast %cst_23 : f32 to vector<16x32xf32>
    %32 = arith.maximumf %30, %31 : vector<16x32xf32>
    %33 = arith.truncf %32 : vector<16x32xf32> to vector<16x32xbf16>
    %c0_24 = arith.constant 0 : index
    %c0_25 = arith.constant 0 : index
    %34 = vector.load %arg10[%c0_24, %c0_25] : memref<32x128xbf16, #tpu.memory_space<vmem>>, vector<32x128xbf16>
    %cst_26 = arith.constant dense<0.000000e+00> : vector<16x128xf32>
    %35 = tpu.matmul %33, %34, %cst_26 {dimension_numbers = #tpu.dot_dimension_numbers<[1], [0], [0], [1], [0, 0, 1, 1], [], []>} : vector<16x32xbf16>, vector<32x128xbf16>, vector<16x128xf32> -> vector<16x128xf32>
    %c0_27 = arith.constant 0 : index
    %c0_28 = arith.constant 0 : index
    %36 = vector.load %arg11[%c0_27, %c0_28] : memref<1x128xf32, #tpu.memory_space<vmem>>, vector<1x128xf32>
    %37 = vector.broadcast %36 : vector<1x128xf32> to vector<16x128xf32>
    %38 = arith.addf %35, %37 : vector<16x128xf32>
    %39 = arith.truncf %38 : vector<16x128xf32> to vector<16x128xbf16>
    %c0_29 = arith.constant 0 : index
    %c0_30 = arith.constant 0 : index
    %40 = vector.load %arg12[%c0_29, %c0_30] : memref<16x128xbf16, #tpu.memory_space<vmem>>, vector<16x128xbf16>
    tpu.vector_store %arg12[%c0_29, %c0_30], %39 {strides = array<i32>} : memref<16x128xbf16, #tpu.memory_space<vmem>>, vector<16x128xbf16>,
    return
  }
  func.func @transform_0(%arg0: i32) -> (i32, i32) {
    %c0_i32 = arith.constant 0 : i32
    %c0_i32_0 = arith.constant 0 : i32
    return %arg0, %c0_i32 : i32, i32
  }
  func.func @transform_1(%arg0: i32) -> (i32, i32) {
    %c0_i32 = arith.constant 0 : i32
    %c0_i32_0 = arith.constant 0 : i32
    %c0_i32_1 = arith.constant 0 : i32
    return %c0_i32, %c0_i32_0 : i32, i32
  }
  func.func @transform_2(%arg0: i32) -> (i32, i32) {
    %c0_i32 = arith.constant 0 : i32
    %c0_i32_0 = arith.constant 0 : i32
    %c0_i32_1 = arith.constant 0 : i32
    return %c0_i32, %c0_i32_0 : i32, i32
  }
  func.func @transform_3(%arg0: i32) -> (i32, i32) {
    %c0_i32 = arith.constant 0 : i32
    %c0_i32_0 = arith.constant 0 : i32
    %c0_i32_1 = arith.constant 0 : i32
    return %c0_i32, %c0_i32_0 : i32, i32
  }
  func.func @transform_4(%arg0: i32) -> (i32, i32) {
    %c0_i32 = arith.constant 0 : i32
    %c0_i32_0 = arith.constant 0 : i32
    %c0_i32_1 = arith.constant 0 : i32
    return %c0_i32, %c0_i32_0 : i32, i32
  }
  func.func @transform_5(%arg0: i32) -> (i32, i32) {
    %c0_i32 = arith.constant 0 : i32
    %c0_i32_0 = arith.constant 0 : i32
    %c0_i32_1 = arith.constant 0 : i32
    return %c0_i32, %c0_i32_0 : i32, i32
  }
  func.func @transform_6(%arg0: i32) -> (i32, i32) {
    %c0_i32 = arith.constant 0 : i32
    %c0_i32_0 = arith.constant 0 : i32
    %c0_i32_1 = arith.constant 0 : i32
    return %c0_i32, %c0_i32_0 : i32, i32
  }
  func.func @transform_7(%arg0: i32) -> (i32, i32) {
    %c0_i32 = arith.constant 0 : i32
    %c0_i32_0 = arith.constant 0 : i32
    %c0_i32_1 = arith.constant 0 : i32
    return %c0_i32, %c0_i32_0 : i32, i32
  }
  func.func @transform_8(%arg0: i32) -> (i32, i32) {
    %c0_i32 = arith.constant 0 : i32
    %c0_i32_0 = arith.constant 0 : i32
    %c0_i32_1 = arith.constant 0 : i32
    return %c0_i32, %c0_i32_0 : i32, i32
  }
  func.func @transform_9(%arg0: i32) -> (i32, i32) {
    %c0_i32 = arith.constant 0 : i32
    %c0_i32_0 = arith.constant 0 : i32
    %c0_i32_1 = arith.constant 0 : i32
    return %c0_i32, %c0_i32_0 : i32, i32
  }
  func.func @transform_10(%arg0: i32) -> (i32, i32) {
    %c0_i32 = arith.constant 0 : i32
    %c0_i32_0 = arith.constant 0 : i32
    %c0_i32_1 = arith.constant 0 : i32
    return %c0_i32, %c0_i32_0 : i32, i32
  }
  func.func @transform_11(%arg0: i32) -> (i32, i32) {
    %c0_i32 = arith.constant 0 : i32
    %c0_i32_0 = arith.constant 0 : i32
    return %arg0, %c0_i32 : i32, i32
  }
}

</mosaic_0001>

<bundles_post_ra>
// kernel: lowrank_net_forward.1
= control target key start
LH: loop header
LB: loop body
LE: loop exit
PB: predicated region body
PF: predicated region fallthrough
CT: control target
= control target key end

     0   :  { %v1175_v43 = vmov 0.0   ;;  %vm1176_vm0 = vmmov 0   ;;  %vm459_vm1 = vcmask 130048   ;;  %vm653_vm2 = vcmask 261120   ;;  %s1491_s1 = inlined_call_operand.vmem [shape: bf16[784,32], index: 1, kind: input, shape index: {}]   ;;  %s1492_s0 = inlined_call_operand.vmem [shape: f32[16,784], index: 0, kind: input, shape index: {}]   ;;  %s1493_s3 = inlined_call_operand.vmem [shape: bf16[32,32], index: 3, kind: input, shape index: {}]   ;;  %s1494_s2 = inlined_call_operand.vmem [shape: f32[1,32], index: 2, kind: input, shape index: {}]   ;;  %s1495_s5 = inlined_call_operand.vmem [shape: bf16[32,32], index: 5, kind: input, shape index: {}]   ;;  %s1496_s4 = inlined_call_operand.vmem [shape: f32[1,32], index: 4, kind: input, shape index: {}]   ;;  %s1497_s7 = inlined_call_operand.vmem [shape: bf16[32,32], index: 7, kind: input, shape index: {}]   ;;  %s1498_s6 = inlined_call_operand.vmem [shape: f32[1,32], index: 6, kind: input, shape index: {}]   ;;  %s1499_s9 = inlined_call_operand.vmem [shape: bf16[32,128], index: 9, kind: input, shape index: {}]   ;;  %s1500_s8 = inlined_call_operand.vmem [shape: f32[1,32], index: 8, kind: input, shape index: {}]   ;;  %s1501_s10 = inlined_call_operand.vmem [shape: f32[1,128], index: 10, kind: input, shape index: {}]   ;;  %s1502_s11 = inlined_call_operand.vmem [shape: bf16[16,128], index: 11, kind: output, shape index: {}]  }
   0x1   :  { %v1118_v0 = vld [vmem:[%s1491_s1 + $0x40] sm:$0xff]   ;;  %v1122_v4 = vld [vmem:[%s1491_s1 + $0x48] sm:$0xff]   ;;  %v1126_v8 = vld [vmem:[%s1491_s1 + $0x50] sm:$0xff]  }
   0x2   :  { %v1119_v1 = vld [vmem:[%s1491_s1] sm:$0xff]   ;;  %998 = vmatprep.subr.bf16.mxu0 %v1118_v0  ;;  %v1123_v5 = vld [vmem:[%s1491_s1 + $0x8] sm:$0xff]   ;;  %v1127_v9 = vld [vmem:[%s1491_s1 + $0x10] sm:$0xff]  }
   0x3   :  { %v1120_v2 = vld [vmem:[%s1491_s1 + $0xc0] sm:$0xff]   ;;  %999 = vmatpush3.bf16.msra.mxu0 %v1119_v1  ;;  %v1124_v6 = vld [vmem:[%s1491_s1 + $0xc8] sm:$0xff]   ;;  %v1128_v10 = vld [vmem:[%s1491_s1 + $0xd0] sm:$0xff]  }
   0x4   :  { %v1121_v3 = vld [vmem:[%s1491_s1 + $0x80] sm:$0xff]   ;;  %1020 = vmatprep.subr.bf16.mxu1 %v1120_v2  ;;  %1000 = vmatprep.subr.bf16.mxu0 %v1122_v4  ;;  %v1125_v7 = vld [vmem:[%s1491_s1 + $0x88] sm:$0xff]   ;;  %v1129_v11 = vld [vmem:[%s1491_s1 + $0x90] sm:$0xff]  }
   0x5   :  { %1021 = vmatpush3.bf16.msra.mxu1 %v1121_v3  ;;  %v1130_v12 = vld [vmem:[%s1491_s1 + $0x58] sm:$0xff]   ;;  %v1134_v16 = vld [vmem:[%s1491_s1 + $0x60] sm:$0xff]   ;;  %v1138_v20 = vld [vmem:[%s1491_s1 + $0x68] sm:$0xff]  }
   0x6   :  { %1022 = vmatprep.subr.bf16.mxu1 %v1124_v6  ;;  %v1131_v13 = vld [vmem:[%s1491_s1 + $0x18] sm:$0xff]   ;;  %v1135_v17 = vld [vmem:[%s1491_s1 + $0x20] sm:$0xff]   ;;  %v1139_v21 = vld [vmem:[%s1491_s1 + $0x28] sm:$0xff]  }
   0x7   :  { %1001 = vmatpush3.bf16.msra.mxu0 %v1123_v5  ;;  %v1132_v14 = vld [vmem:[%s1491_s1 + $0xd8] sm:$0xff]   ;;  %v1136_v18 = vld [vmem:[%s1491_s1 + $0xe0] sm:$0xff]   ;;  %v1140_v22 = vld [vmem:[%s1491_s1 + $0xe8] sm:$0xff]  }
   0x8   :  { %1002 = vmatprep.subr.bf16.mxu0 %v1126_v8  ;;  %v1133_v15 = vld [vmem:[%s1491_s1 + $0x98] sm:$0xff]   ;;  %v1137_v19 = vld [vmem:[%s1491_s1 + $0xa0] sm:$0xff]   ;;  %v1141_v23 = vld [vmem:[%s1491_s1 + $0xa8] sm:$0xff]  }
   0x9   :  { %1023 = vmatpush3.bf16.msra.mxu1 %v1125_v7  ;;  %v1142_v24 = vld [vmem:[%s1491_s1 + $0x70] sm:$0xff]   ;;  %v1146_v28 = vld [vmem:[%s1491_s1 + $0x78] sm:$0xff]   ;;  %v40_v31 = vld [vmem:[%s1492_s0 + $0x8] sm:$0xff] }
   0xa   :  { %1024 = vmatprep.subr.bf16.mxu1 %v1128_v10  ;;  %v1143_v25 = vld [vmem:[%s1491_s1 + $0x30] sm:$0xff]   ;;  %v1147_v29 = vld [vmem:[%s1491_s1 + $0x38] sm:$0xff]   ;;  %v47_v32 = vld [vmem:[%s1492_s0 + $0x40] sm:$0xff] }
   0xb   :  { %1003 = vmatpush3.bf16.msra.mxu0 %v1127_v9  ;;  %v1144_v26 = vld [vmem:[%s1491_s1 + $0xf0] sm:$0xff]   ;;  %v1148_v30 = vld [vmem:[%s1491_s1 + $0xf8] sm:$0xff]   ;;  %v54_v33 = vpack.c.bf16 %v47_v32, %v40_v31  ;;  %v39_v35 = vld [vmem:[%s1492_s0] sm:$0xff] }
   0xc   :  { %1004 = vmatprep.subr.bf16.mxu0 %v1130_v12  ;;  %v1145_v27 = vld [vmem:[%s1491_s1 + $0xb0] sm:$0xff]   ;;  %v1149_v34 = vld [vmem:[%s1491_s1 + $0xb8] sm:$0xff]   ;;  %v1150_v38 = vld [vmem:[%s1491_s1 + $0x140] sm:$0xff]  }
   0xd   :  { %1025 = vmatpush3.bf16.msra.mxu1 %v1129_v11  ;;  %v46_v36 = vld [vmem:[%s1492_s0 + $0x38] sm:$0xff]  ;;  %495 = vmatprep.mubr.bf16.mxu0 %v54_v33  ;;  %v49_v40 = vld [vmem:[%s1492_s0 + $0x50] sm:$0xff]  ;;  %v1151_v42 = vld [vmem:[%s1491_s1 + $0x100] sm:$0xff]  }
   0xe   :  { %1026 = vmatprep.subr.bf16.mxu1 %v1132_v14  ;;  %v53_v37 = vpack.c.bf16 %v46_v36, %v39_v35  ;;  %v42_v39 = vld [vmem:[%s1492_s0 + $0x18] sm:$0xff]  ;;  %v41_v44 = vld [vmem:[%s1492_s0 + $0x10] sm:$0xff]  ;;  %v48_v45 = vld [vmem:[%s1492_s0 + $0x48] sm:$0xff] }
   0xf   :  { %1005 = vmatpush3.bf16.msra.mxu0 %v1131_v13  ;;  %v56_v41 = vpack.c.bf16 %v49_v40, %v42_v39  ;;  %v55_v46 = vpack.c.bf16 %v48_v45, %v41_v44  ;;  %v1152_v47 = vld [vmem:[%s1491_s1 + $0x148] sm:$0xff]   ;;  %v1154_v49 = vld [vmem:[%s1491_s1 + $0x150] sm:$0xff]   ;;  %v1156_v51 = vld [vmem:[%s1491_s1 + $0x158] sm:$0xff]  }
  0x10   :  { %1006 = vmatprep.subr.bf16.mxu0 %v1134_v16  ;;  %v1153_v48 = vld [vmem:[%s1491_s1 + $0x108] sm:$0xff]   ;;  %v1155_v50 = vld [vmem:[%s1491_s1 + $0x110] sm:$0xff]   ;;  %v1157_v52 = vld [vmem:[%s1491_s1 + $0x118] sm:$0xff]  }
  0x11   :  { %1027 = vmatpush3.bf16.msra.mxu1 %v1133_v15  ;;  %536 = vmatprep.mubr.bf16.mxu1 %v56_v41  ;;  %v1158_v53 = vld [vmem:[%s1491_s1 + $0x160] sm:$0xff]   ;;  %v1160_v55 = vld [vmem:[%s1491_s1 + $0x168] sm:$0xff]   ;;  %v45_v61 = vld [vmem:[%s1492_s0 + $0x30] sm:$0xff] }
  0x12   :  { %1028 = vmatprep.subr.bf16.mxu1 %v1136_v18  ;;  %v1159_v54 = vld [vmem:[%s1491_s1 + $0x120] sm:$0xff]   ;;  %v44_v57 = vld [vmem:[%s1492_s0 + $0x28] sm:$0xff]  ;;  %v1162_v63 = vld [vmem:[%s1491_s1 + $0x170] sm:$0xff]  }
  0x13   :  { %1007 = vmatpush3.bf16.msra.mxu0 %v1135_v17  ;;  %v1166_v56 = vld [vmem:[%s1491_s1 + $0x180] sm:$0xff]   ;;  %v1161_v59 = vld [vmem:[%s1491_s1 + $0x128] sm:$0xff]   ;;  %v1163_v1 = vld [vmem:[%s1491_s1 + $0x130] sm:$0xff]  }
  0x14   :  { %1008 = vmatprep.subr.bf16.mxu0 %v1138_v20  ;;  %v51_v58 = vld [vmem:[%s1492_s0 + $0x60] sm:$0xff]  ;;  %v52_v62 = vld [vmem:[%s1492_s0 + $0x68] sm:$0xff]  ;;  %v1164_v2 = vld [vmem:[%s1491_s1 + $0x178] sm:$0xff]  }
  0x15   :  { %1029 = vmatpush3.bf16.msra.mxu1 %v1137_v19  ;;  %v58_v60 = vpack.c.bf16 %v51_v58, %v44_v57  ;;  %v59_v0 = vpack.c.bf16 %v52_v62, %v45_v61  ;;  %v1165_v3 = vld [vmem:[%s1491_s1 + $0x138] sm:$0xff]   ;;  %v43_v4 = vld [vmem:[%s1492_s0 + $0x20] sm:$0xff]  ;;  %v1168_v8 = vld [vmem:[%s1493_s3 + $0x8] sm:$0xff]  }
  0x16   :  { %1030 = vmatprep.subr.bf16.mxu1 %v1140_v22  ;;  %v50_v5 = vld [vmem:[%s1492_s0 + $0x58] sm:$0xff]  ;;  %v1167_v7 = vld [vmem:[%s1493_s3] sm:$0xff]   ;;  %v1170_v45 = vld [vmem:[%s1495_s5 + $0x8] sm:$0xff]  }
  0x17   :  { %1009 = vmatpush3.bf16.msra.mxu0 %v1139_v21  ;;  %v57_v6 = vpack.c.bf16 %v50_v5, %v43_v4  ;;  %v922_v10 = vld [vmem:[%s1494_s2] ss:$0 sm:$0xff]  ;;  %v1172_v57 = vld [vmem:[%s1497_s7 + $0x8] sm:$0xff]  }
  0x18   :  { %1010 = vmatprep.subr.bf16.mxu0 %v1142_v24  ;;  %v1169_v44 = vld [vmem:[%s1495_s5] sm:$0xff]   ;;  %v1174_v5 = vld [vmem:[%s1499_s9 + $0x8] sm:$0xff]  }
  0x19   :  { %1031 = vmatpush3.bf16.msra.mxu1 %v1141_v23  ;;  %v977_v58 = vld [vmem:[%s1498_s6] ss:$0 sm:$0xff] }
  0x1a   :  { %1032 = vmatprep.subr.bf16.mxu1 %v1144_v26  ;;  %v1173_v4 = vld [vmem:[%s1499_s9] sm:$0xff]  }
  0x1b   :  { %1011 = vmatpush3.bf16.msra.mxu0 %v1143_v25 }
  0x1c   :  { %1012 = vmatprep.subr.bf16.mxu0 %v1146_v28 }
  0x1d   :  { %1033 = vmatpush3.bf16.msra.mxu1 %v1145_v27 }
  0x1e   :  { %1034 = vmatprep.subr.bf16.mxu1 %v1148_v30 }
  0x1f   :  { %1013 = vmatpush3.bf16.msra.mxu0 %v1147_v29 }
  0x20   :  { %1042 = vmatprep.subr.bf16.mxu0 %v1150_v38 }
  0x21   :  { %1035 = vmatpush3.bf16.msra.mxu1 %v1149_v34 }
  0x22   :  { %1078 = vmatprep.subr.bf16.mxu1 %v1175_v43  ;;  %496 = vmatmul.mubr.bf16.vlgmr.msra.gmra.mrb[0].mxu0 %v53_v37 }
  0x23   :  { %1043 = vmatpush3.bf16.msra.mxu0 %v1151_v42  ;;  %577 = vmatprep.mubr.bf16.mxu0 %v58_v60 }
  0x24   :  { %537 = vmatmul.mubr.bf16.vlgmr.msra.gmra.mrb[0].mxu1 %v55_v46  ;;  %1044 = vmatprep.subr.bf16.mxu0 %v1152_v47  ;;  %v973_v46 = vld [vmem:[%s1496_s4] ss:$0 sm:$0xff] }
  0x25   :  { %1080 = vmatprep.mubr.msk.bf16.mxu1 %vm1176_vm0, %v1175_v43  ;;  %1079 = vmatpush3.bf16.msra.mxu1 %v1166_v56  ;;  %v1171_v56 = vld [vmem:[%s1497_s7] sm:$0xff]  }
  0x26   :  { %1084 = vmatprep.subr.bf16.mxu1 %v1175_v43 }
  0x27   :  { %1045 = vmatpush3.bf16.msra.mxu0 %v1153_v48 }
  0x28   :  { %1046 = vmatprep.subr.bf16.mxu0 %v1154_v49 }
  0x2b   :  { %1047 = vmatpush3.bf16.msra.mxu0 %v1155_v50 }
  0x2c   :  { %1048 = vmatprep.subr.bf16.mxu0 %v1156_v51  ;;  %1081 = vmatmul.mubr.msk.bf16.vlgmr.msra.gmra.mrb[4].mxu1 %vm459_vm1, %v59_v0 }
  0x2d   :  { %1088 = vmatprep.mubr.msk.bf16.mxu1 %vm1176_vm0, %v1175_v43  ;;  %1085 = vmatpush3.bf16.msra.mxu1 %v1167_v7 }
  0x2e   :  { %1086 = vmatprep.subr.bf16.mxu1 %v1175_v43 }
  0x2f   :  { %1049 = vmatpush3.bf16.msra.mxu0 %v1157_v52 }
  0x30   :  { %1050 = vmatprep.subr.bf16.mxu0 %v1158_v53 }
  0x31   :  { %1087 = vmatpush3.bf16.msra.mxu1 %v1168_v8 }
  0x32   :  { %1092 = vmatprep.subr.bf16.mxu1 %v1175_v43 }
  0x33   :  { %1051 = vmatpush3.bf16.msra.mxu0 %v1159_v54 }
  0x34   :  { %1052 = vmatprep.subr.bf16.mxu0 %v1160_v55 }
  0x37   :  { %1053 = vmatpush3.bf16.msra.mxu0 %v1161_v59 }
  0x38   :  { %1054 = vmatprep.subr.bf16.mxu0 %v1162_v63 }
  0x3b   :  { %1055 = vmatpush3.bf16.msra.mxu0 %v1163_v1 }
  0x3c   :  { %1056 = vmatprep.subr.bf16.mxu0 %v1164_v2 }
  0x3f   :  { %1057 = vmatpush3.bf16.msra.mxu0 %v1165_v3 }
  0x40   :  { %1108 = vmatprep.subr.bf16.mxu0 %v1175_v43 }
  0x42   :  { %578 = vmatmul.mubr.bf16.vlgmr.msra.gmra.mrb[4].mxu0 %v57_v6  ;;  %v981_v6 = vld [vmem:[%s1500_s8] ss:$0 sm:$0xff] }
  0x43   :  { %1112 = vmatprep.mubr.msk.bf16.mxu0 %vm1176_vm0, %v1175_v43  ;;  %1109 = vmatpush3.bf16.msra.mxu0 %v1173_v4 }
  0x44   :  { %1110 = vmatprep.subr.bf16.mxu0 %v1175_v43 }
  0x47   :  { %1111 = vmatpush3.bf16.msra.mxu0 %v1174_v5 }
  0xf5   :  { %v1014_v9 = vpop.f32.mrb[0].mxu0 }
  0xf6   :  { %v1015_v11 = vpop.f32.mrb[1].mxu0 }
  0xf7   :  { %v1016_v12 = vadd.f32 %v1015_v11, %v1014_v9  ;;  %v1017_v13 = vpop.f32.mrb[2].mxu0  ;;  %v1036_v14 = vpop.f32.mrb[0].mxu1 }
  0xf8   :  { %v1018_v15 = vpop.f32.mrb[3].mxu0  ;;  %v1037_v18 = vpop.f32.mrb[1].mxu1 }
  0xf9   :  { %v498_v16 = vadd.f32 %v1016_v12, %v922_v10  ;;  %v1019_v17 = vadd.f32 %v1018_v15, %v1017_v13  ;;  %v1038_v19 = vadd.f32 %v1037_v18, %v1036_v14  ;;  %v1039_v20 = vpop.f32.mrb[2].mxu1 }
  0xfa   :  { %v1040_v22 = vpop.f32.mrb[3].mxu1 }
  0xfb   :  { %v501_v21 = vadd.f32 %v1019_v17, %v922_v10  ;;  %v539_v23 = vadd.f32 %v1038_v19, %v498_v16  ;;  %v1041_v24 = vadd.f32 %v1040_v22, %v1039_v20 }
  0xfd   :  { %v542_v25 = vadd.f32 %v1041_v24, %v501_v21 }
  0xff   :  { %v620_v26 = vpop.f32.mrb[4].mxu1 }
 0x100   :  { %v1082_v27 = vpop.f32.mrb[5].mxu1 }
 0x101   :  { %v623_v28 = vpop.f32.mrb[6].mxu1 }
 0x102   :  { %v1083_v29 = vpop.f32.mrb[7].mxu1 }
 0x115   :  { %v1058_v30 = vpop.f32.mrb[4].mxu0 }
 0x116   :  { %v1059_v31 = vpop.f32.mrb[5].mxu0 }
 0x117   :  { %v1060_v32 = vadd.f32 %v1059_v31, %v1058_v30  ;;  %v1061_v33 = vpop.f32.mrb[6].mxu0 }
 0x118   :  { %v1062_v34 = vpop.f32.mrb[7].mxu0 }
 0x119   :  { %v580_v35 = vadd.f32 %v1060_v32, %v539_v23  ;;  %v1063_v36 = vadd.f32 %v1062_v34, %v1061_v33 }
 0x11b   :  { %v621_v37 = vadd.f32 %v620_v26, %v580_v35  ;;  %v583_v38 = vadd.f32 %v1063_v36, %v542_v25 }
 0x11d   :  { %v624_v39 = vadd.f32 %v623_v28, %v583_v38  ;;  %v627_v40 = vmax.f32 %v621_v37, 0.0 }
 0x11f   :  { %v628_v41 = vmax.f32 %v624_v39, 0.0 }
 0x121   :  { %v629_v42 = vpack.c.bf16 %v628_v41, %v627_v40 }
 0x123   :  { %1089 = vmatmul.mubr.msk.bf16.vlgmr.msra.gmra.mrb[8].mxu1 %vm653_vm2, %v629_v42 }
 0x124   :  { %1096 = vmatprep.mubr.msk.bf16.mxu1 %vm1176_vm0, %v1175_v43  ;;  %1093 = vmatpush3.bf16.msra.mxu1 %v1169_v44 }
 0x125   :  { %1094 = vmatprep.subr.bf16.mxu1 %v1175_v43 }
 0x128   :  { %1095 = vmatpush3.bf16.msra.mxu1 %v1170_v45 }
 0x129   :  { %1100 = vmatprep.subr.bf16.mxu1 %v1175_v43 }
 0x1f6   :  { %v691_v47 = vpop.f32.mrb[8].mxu1 }
 0x1f7   :  { %v692_v48 = vadd.f32 %v973_v46, %v691_v47  ;;  %v1090_v49 = vpop.f32.mrb[9].mxu1 }
 0x1f8   :  { %v694_v50 = vpop.f32.mrb[10].mxu1 }
 0x1f9   :  { %v695_v51 = vadd.f32 %v973_v46, %v694_v50  ;;  %v1091_v52 = vpop.f32.mrb[11].mxu1  ;;  %v698_v53 = vmax.f32 %v692_v48, 0.0 }
 0x1fb   :  { %v699_v54 = vmax.f32 %v695_v51, 0.0 }
 0x1fd   :  { %v700_v55 = vpack.c.bf16 %v699_v54, %v698_v53 }
 0x1ff   :  { %1097 = vmatmul.mubr.msk.bf16.vlgmr.msra.gmra.mrb[12].mxu1 %vm653_vm2, %v700_v55 }
 0x200   :  { %1104 = vmatprep.mubr.msk.bf16.mxu1 %vm1176_vm0, %v1175_v43  ;;  %1101 = vmatpush3.bf16.msra.mxu1 %v1171_v56 }
 0x201   :  { %1102 = vmatprep.subr.bf16.mxu1 %v1175_v43  ;;  %v985_v43 = vld [vmem:[%s1501_s10] ss:$0 sm:$0xff] }
 0x204   :  { %1103 = vmatpush3.bf16.msra.mxu1 %v1172_v57 }
 0x2d2   :  { %v761_v59 = vpop.f32.mrb[12].mxu1 }
 0x2d3   :  { %v762_v60 = vadd.f32 %v977_v58, %v761_v59  ;;  %v1098_v61 = vpop.f32.mrb[13].mxu1 }
 0x2d4   :  { %v764_v62 = vpop.f32.mrb[14].mxu1 }
 0x2d5   :  { %v765_v63 = vadd.f32 %v977_v58, %v764_v62  ;;  %v1099_v0 = vpop.f32.mrb[15].mxu1  ;;  %v768_v1 = vmax.f32 %v762_v60, 0.0 }
 0x2d7   :  { %v769_v2 = vmax.f32 %v765_v63, 0.0 }
 0x2d9   :  { %v770_v3 = vpack.c.bf16 %v769_v2, %v768_v1 }
 0x2db   :  { %1105 = vmatmul.mubr.msk.bf16.vlgmr.msra.gmra.mrb[16].mxu1 %vm653_vm2, %v770_v3 }
 0x3ae   :  { %v831_v7 = vpop.f32.mrb[16].mxu1 }
 0x3af   :  { %v832_v8 = vadd.f32 %v981_v6, %v831_v7  ;;  %v1106_v9 = vpop.f32.mrb[17].mxu1 }
 0x3b0   :  { %v834_v10 = vpop.f32.mrb[18].mxu1 }
 0x3b1   :  { %v835_v11 = vadd.f32 %v981_v6, %v834_v10  ;;  %v1107_v12 = vpop.f32.mrb[19].mxu1  ;;  %v838_v13 = vmax.f32 %v832_v8, 0.0 }
 0x3b3   :  { %v839_v14 = vmax.f32 %v835_v11, 0.0 }
 0x3b5   :  { %v840_v15 = vpack.c.bf16 %v839_v14, %v838_v13 }
 0x3b7   :  { %1113 = vmatmul.mubr.msk.bf16.vlgmr.msra.gmra.mrb[8].mxu0 %vm653_vm2, %v840_v15 }
 0x48a   :  { %v901_v16 = vpop.f32.mrb[8].mxu0 }
 0x48b   :  { %v1114_v17 = vpop.f32.mrb[9].mxu0  ;;  %v902_v19 = vadd.f32 %v985_v43, %v901_v16 }
 0x48c   :  { %v904_v18 = vpop.f32.mrb[10].mxu0 }
 0x48d   :  { %v905_v20 = vadd.f32 %v985_v43, %v904_v18  ;;  %v1115_v21 = vpop.f32.mrb[11].mxu0 }
 0x48f   :  { %v996_v22 = vpack.c.bf16 %v905_v20, %v902_v19 }
 0x491   :  { %997 = vst [vmem:[%s1502_s11] sm:$0xff] %v996_v22  }

</bundles_post_ra>
